<compile_context>
chip_gen: v5e
topology: v5e:2x2
jax: 0.10.0
libtpu: 0.0.40
codegen_flags: <defaults>
</compile_context>

<pallas_src>
import jax
import jax.numpy as jnp
from jax.experimental import pallas as pl
from jax.experimental.pallas import tpu as pltpu

EPS = 1e-6
FACTOR = 1.0


def _dsu_kernel(x_ref, nmu_ref, nstd_ref, o_ref):
    """One channel tile: spatial stats, batch-dim sqrtvar, reparam, fused re-style."""
    x = x_ref[...].astype(jnp.float32)                 # (B, tC, HW)
    B = x.shape[0]
    HW = x.shape[2]

    # Per-(sample, channel) spatial statistics in a single sweep.
    # Unbiased var (divisor HW-1), matching torch .var(dim=[2,3]).
    s1 = jnp.sum(x, axis=-1, keepdims=True)            # (B, tC, 1)
    s2 = jnp.sum(x * x, axis=-1, keepdims=True)        # (B, tC, 1)
    mean = s1 * (1.0 / HW)
    var = (s2 - HW * mean * mean) * (1.0 / (HW - 1))
    var = jnp.maximum(var, 0.0)                        # guard tiny negative from cancellation
    std = jnp.sqrt(var + EPS)                          # (B, tC, 1)
    inv_std = 1.0 / std                                # tiny; EUP reciprocal on stats only

    # sqrtvar over the batch dimension (unbiased), broadcast back over batch.
    # NOTE: B == 1 divides by zero -> NaN, same as torch.var(dim=0, unbiased=True).
    def sqrtvar_batch(t):                              # (B, tC, 1) -> (1, tC, 1)
        tm = jnp.mean(t, axis=0, keepdims=True)
        v = jnp.sum((t - tm) ** 2, axis=0, keepdims=True) * (1.0 / (B - 1))
        return jnp.sqrt(v + EPS)

    sv_mu = sqrtvar_batch(mean)                        # (1, tC, 1)
    sv_std = sqrtvar_batch(std)                        # (1, tC, 1)

    # Reparameterization: mu + (epsilon * factor) * std_of_stat
    nmu = nmu_ref[...].astype(jnp.float32)             # (B, tC, 1)
    nstd = nstd_ref[...].astype(jnp.float32)
    beta = mean + (nmu * FACTOR) * sv_mu               # (B, tC, 1)
    gamma = std + (nstd * FACTOR) * sv_std             # (B, tC, 1)

    # Fused epilogue: (x - mean)/std * gamma + beta  ==  x*scale + bias
    scale = gamma * inv_std                            # (B, tC, 1)
    bias = beta - mean * scale                         # (B, tC, 1)
    o_ref[...] = (x * scale + bias).astype(o_ref.dtype)


def _pick_channel_tile(B, C, HW):
    """Largest channel tile that divides C, is 8-aligned (or == C), and fits VMEM budget."""
    def block_f32_bytes(tc):
        return B * tc * HW * 4
    budget = 4 * 1024 * 1024  # per x block (f32); ~16 MiB double-buffered in+out -> safe on v7x too
    cands = sorted({d for d in range(8, C + 1, 8) if C % d == 0} | {C})
    fit = [d for d in cands if block_f32_bytes(d) <= budget]
    if fit:
        return max(fit)
    legal = [d for d in cands if d % 8 == 0] or [C]
    return min(legal)


def _run_dsu_kernel(x, noise_mu, noise_std):
    """x: (B, C, H, W); noise_*: (B, C) standard normals.  Returns same shape/dtype as x."""
    B, C, H, W = x.shape
    HW = H * W
    x2 = x.reshape(B, C, HW)                           # keep caller dtype end-to-end
    nmu3 = noise_mu.astype(jnp.float32).reshape(B, C, 1)
    nstd3 = noise_std.astype(jnp.float32).reshape(B, C, 1)

    tC = _pick_channel_tile(B, C, HW)
    grid = (C // tC,)

    y2 = pl.pallas_call(
        _dsu_kernel,
        out_shape=jax.ShapeDtypeStruct((B, C, HW), x.dtype),
        grid=grid,
        in_specs=[
            pl.BlockSpec((B, tC, HW), lambda i: (0, i, 0)),
            pl.BlockSpec((B, tC, 1), lambda i: (0, i, 0)),
            pl.BlockSpec((B, tC, 1), lambda i: (0, i, 0)),
        ],
        out_specs=pl.BlockSpec((B, tC, HW), lambda i: (0, i, 0)),
        compiler_params=pltpu.CompilerParams(
            dimension_semantics=("parallel",),
            vmem_limit_bytes=32 * 1024 * 1024,
        ),
    )(x2, nmu3, nstd3)

    return y2.reshape(B, C, H, W)


def distribution_uncertainty(x, key, p=0.5, training=True):
    """Full module forward.  p-gate and noise draws are wrapper-level glue."""
    if not training:
        return x
    B, C, _, _ = x.shape
    k_gate, k_mu, k_std = jax.random.split(key, 3)
    noise_mu = jax.random.normal(k_mu, (B, C), dtype=jnp.float32)
    noise_std = jax.random.normal(k_std, (B, C), dtype=jnp.float32)
    u = jax.random.uniform(k_gate, ())
    # torch: if np.random.random() > p -> identity, else apply.  lax.cond skips the
    # kernel entirely on the bypass path (jnp.where would always run it).
    return jax.lax.cond(
        u > p,
        lambda a: a,
        lambda a: _run_dsu_kernel(a, noise_mu, noise_std),
        x,
    )
    # TODO(synk): store_feats / domain_list / plot_style are host-side python
    # bookkeeping (numpy/matplotlib/TSNE) with no kernel equivalent; omitted.


def _reference(x, noise_mu, noise_std):
    """Pure-JAX mirror of the PyTorch forward (same noise) for verification."""
    mean = x.mean(axis=(2, 3))
    std = jnp.sqrt(x.var(axis=(2, 3), ddof=1) + EPS)

    def sqrtvar(t):
        return jnp.sqrt(t.var(axis=0, keepdims=True, ddof=1) + EPS)

    beta = mean + noise_mu * FACTOR * sqrtvar(mean)
    gamma = std + noise_std * FACTOR * sqrtvar(std)
    y = (x - mean[:, :, None, None]) / std[:, :, None, None]
    return y * gamma[:, :, None, None] + beta[:, :, None, None]


if __name__ == "__main__":
    key = jax.random.PRNGKey(0)
    kx, kn1, kn2, kcall = jax.random.split(key, 4)

    B, C, H, W = 2, 4, 16, 16
    x = jax.random.normal(kx, (B, C, H, W), dtype=jnp.float32) * 2.0 + 0.5

    # Deterministic noise so kernel and reference see identical epsilon draws.
    noise_mu = jax.random.normal(kn1, (B, C), dtype=jnp.float32)
    noise_std = jax.random.normal(kn2, (B, C), dtype=jnp.float32)

    y_kernel = _run_dsu_kernel(x, noise_mu, noise_std)
    jax.block_until_ready(y_kernel)
    y_ref = _reference(x, noise_mu, noise_std)

    assert y_kernel.shape == x.shape and y_kernel.dtype == x.dtype
    assert jnp.allclose(y_kernel, y_ref, rtol=1e-4, atol=1e-4), (
        "kernel mismatch vs reference")

    # Full forward (with the stochastic p-gate), just to exercise the wrapper.
    y_full = distribution_uncertainty(x, kcall, p=0.5, training=True)
    jax.block_until_ready(y_full)

    print("KERNEL_OK")
</pallas_src>

<mosaic_0001>
module attributes {stable_mosaic.version = 11 : i64} {
  func.func @_dsu_kernel(%arg0: i32, %arg1: memref<2x4x256xf32, #tpu.memory_space<vmem>>, %arg2: memref<2x4x1xf32, #tpu.memory_space<vmem>>, %arg3: memref<2x4x1xf32, #tpu.memory_space<vmem>>, %arg4: memref<2x4x256xf32, #tpu.memory_space<vmem>>) attributes {dimension_semantics = [#tpu.dimension_semantics<parallel>], iteration_bounds = array<i64: 1>, scalar_prefetch = 0 : i64, scratch_operands = 0 : i64, tpu.core_type = #tpu.core_type<tc>, window_params = [{transform_indices = @transform_0, window_bounds = array<i64: 2, 4, 256>}, {transform_indices = @transform_1, window_bounds = array<i64: 2, 4, 1>}, {transform_indices = @transform_2, window_bounds = array<i64: 2, 4, 1>}, {transform_indices = @transform_3, window_bounds = array<i64: 2, 4, 256>}]} {
    %c0 = arith.constant 0 : index
    %c0_0 = arith.constant 0 : index
    %c0_1 = arith.constant 0 : index
    %0 = vector.load %arg1[%c0, %c0_0, %c0_1] : memref<2x4x256xf32, #tpu.memory_space<vmem>>, vector<2x4x256xf32>
    %cst = arith.constant dense<0.000000e+00> : vector<2x4xf32>
    %1 = vector.multi_reduction <add>, %0, %cst [2] : vector<2x4x256xf32> to vector<2x4xf32>
    %2 = vector.shape_cast %1 : vector<2x4xf32> to vector<2x4x1xf32>
    %3 = arith.mulf %0, %0 : vector<2x4x256xf32>
    %cst_2 = arith.constant dense<0.000000e+00> : vector<2x4xf32>
    %4 = vector.multi_reduction <add>, %3, %cst_2 [2] : vector<2x4x256xf32> to vector<2x4xf32>
    %5 = vector.shape_cast %4 : vector<2x4xf32> to vector<2x4x1xf32>
    %cst_3 = arith.constant 3.906250e-03 : f32
    %6 = vector.broadcast %cst_3 : f32 to vector<2x4x1xf32>
    %7 = arith.mulf %2, %6 : vector<2x4x1xf32>
    %cst_4 = arith.constant 2.560000e+02 : f32
    %8 = vector.broadcast %cst_4 : f32 to vector<2x4x1xf32>
    %9 = arith.mulf %8, %7 : vector<2x4x1xf32>
    %10 = arith.mulf %9, %7 : vector<2x4x1xf32>
    %11 = arith.subf %5, %10 : vector<2x4x1xf32>
    %cst_5 = arith.constant 0.00392156886 : f32
    %12 = vector.broadcast %cst_5 : f32 to vector<2x4x1xf32>
    %13 = arith.mulf %11, %12 : vector<2x4x1xf32>
    %cst_6 = arith.constant 0.000000e+00 : f32
    %14 = vector.broadcast %cst_6 : f32 to vector<2x4x1xf32>
    %15 = arith.maximumf %13, %14 : vector<2x4x1xf32>
    %cst_7 = arith.constant 9.99999997E-7 : f32
    %16 = vector.broadcast %cst_7 : f32 to vector<2x4x1xf32>
    %17 = arith.addf %15, %16 : vector<2x4x1xf32>
    %18 = math.sqrt %17 : vector<2x4x1xf32>
    %cst_8 = arith.constant 1.000000e+00 : f32
    %19 = vector.broadcast %cst_8 : f32 to vector<2x4x1xf32>
    %20 = arith.divf %19, %18 : vector<2x4x1xf32>
    %cst_9 = arith.constant dense<0.000000e+00> : vector<4x1xf32>
    %21 = vector.multi_reduction <add>, %7, %cst_9 [0] : vector<2x4x1xf32> to vector<4x1xf32>
    %22 = vector.shape_cast %21 : vector<4x1xf32> to vector<1x4x1xf32>
    %cst_10 = arith.constant 2.000000e+00 : f32
    %23 = vector.broadcast %cst_10 : f32 to vector<1x4x1xf32>
    %24 = arith.divf %22, %23 : vector<1x4x1xf32>
    %25 = vector.broadcast %24 : vector<1x4x1xf32> to vector<2x4x1xf32>
    %26 = arith.subf %7, %25 : vector<2x4x1xf32>
    %27 = arith.mulf %26, %26 : vector<2x4x1xf32>
    %cst_11 = arith.constant dense<0.000000e+00> : vector<4x1xf32>
    %28 = vector.multi_reduction <add>, %27, %cst_11 [0] : vector<2x4x1xf32> to vector<4x1xf32>
    %29 = vector.shape_cast %28 : vector<4x1xf32> to vector<1x4x1xf32>
    %cst_12 = arith.constant 1.000000e+00 : f32
    %30 = vector.broadcast %cst_12 : f32 to vector<1x4x1xf32>
    %31 = arith.mulf %29, %30 : vector<1x4x1xf32>
    %cst_13 = arith.constant 9.99999997E-7 : f32
    %32 = vector.broadcast %cst_13 : f32 to vector<1x4x1xf32>
    %33 = arith.addf %31, %32 : vector<1x4x1xf32>
    %34 = math.sqrt %33 : vector<1x4x1xf32>
    %cst_14 = arith.constant dense<0.000000e+00> : vector<4x1xf32>
    %35 = vector.multi_reduction <add>, %18, %cst_14 [0] : vector<2x4x1xf32> to vector<4x1xf32>
    %36 = vector.shape_cast %35 : vector<4x1xf32> to vector<1x4x1xf32>
    %cst_15 = arith.constant 2.000000e+00 : f32
    %37 = vector.broadcast %cst_15 : f32 to vector<1x4x1xf32>
    %38 = arith.divf %36, %37 : vector<1x4x1xf32>
    %39 = vector.broadcast %38 : vector<1x4x1xf32> to vector<2x4x1xf32>
    %40 = arith.subf %18, %39 : vector<2x4x1xf32>
    %41 = arith.mulf %40, %40 : vector<2x4x1xf32>
    %cst_16 = arith.constant dense<0.000000e+00> : vector<4x1xf32>
    %42 = vector.multi_reduction <add>, %41, %cst_16 [0] : vector<2x4x1xf32> to vector<4x1xf32>
    %43 = vector.shape_cast %42 : vector<4x1xf32> to vector<1x4x1xf32>
    %cst_17 = arith.constant 1.000000e+00 : f32
    %44 = vector.broadcast %cst_17 : f32 to vector<1x4x1xf32>
    %45 = arith.mulf %43, %44 : vector<1x4x1xf32>
    %cst_18 = arith.constant 9.99999997E-7 : f32
    %46 = vector.broadcast %cst_18 : f32 to vector<1x4x1xf32>
    %47 = arith.addf %45, %46 : vector<1x4x1xf32>
    %48 = math.sqrt %47 : vector<1x4x1xf32>
    %c0_19 = arith.constant 0 : index
    %c0_20 = arith.constant 0 : index
    %c0_21 = arith.constant 0 : index
    %49 = vector.load %arg2[%c0_19, %c0_20, %c0_21] : memref<2x4x1xf32, #tpu.memory_space<vmem>>, vector<2x4x1xf32>
    %c0_22 = arith.constant 0 : index
    %c0_23 = arith.constant 0 : index
    %c0_24 = arith.constant 0 : index
    %50 = vector.load %arg3[%c0_22, %c0_23, %c0_24] : memref<2x4x1xf32, #tpu.memory_space<vmem>>, vector<2x4x1xf32>
    %cst_25 = arith.constant 1.000000e+00 : f32
    %51 = vector.broadcast %cst_25 : f32 to vector<2x4x1xf32>
    %52 = arith.mulf %49, %51 : vector<2x4x1xf32>
    %53 = vector.broadcast %34 : vector<1x4x1xf32> to vector<2x4x1xf32>
    %54 = arith.mulf %52, %53 : vector<2x4x1xf32>
    %55 = arith.addf %7, %54 : vector<2x4x1xf32>
    %cst_26 = arith.constant 1.000000e+00 : f32
    %56 = vector.broadcast %cst_26 : f32 to vector<2x4x1xf32>
    %57 = arith.mulf %50, %56 : vector<2x4x1xf32>
    %58 = vector.broadcast %48 : vector<1x4x1xf32> to vector<2x4x1xf32>
    %59 = arith.mulf %57, %58 : vector<2x4x1xf32>
    %60 = arith.addf %18, %59 : vector<2x4x1xf32>
    %61 = arith.mulf %60, %20 : vector<2x4x1xf32>
    %62 = arith.mulf %7, %61 : vector<2x4x1xf32>
    %63 = arith.subf %55, %62 : vector<2x4x1xf32>
    %64 = vector.broadcast %61 : vector<2x4x1xf32> to vector<2x4x256xf32>
    %65 = arith.mulf %0, %64 : vector<2x4x256xf32>
    %66 = vector.broadcast %63 : vector<2x4x1xf32> to vector<2x4x256xf32>
    %67 = arith.addf %65, %66 : vector<2x4x256xf32>
    %c0_27 = arith.constant 0 : index
    %c0_28 = arith.constant 0 : index
    %c0_29 = arith.constant 0 : index
    %68 = vector.load %arg4[%c0_27, %c0_28, %c0_29] : memref<2x4x256xf32, #tpu.memory_space<vmem>>, vector<2x4x256xf32>
    tpu.vector_store %arg4[%c0_27, %c0_28, %c0_29], %67 {strides = array<i32>} : memref<2x4x256xf32, #tpu.memory_space<vmem>>, vector<2x4x256xf32>,
    return
  }
  func.func @transform_0(%arg0: i32) -> (i32, i32, i32) {
    %c0_i32 = arith.constant 0 : i32
    %c0_i32_0 = arith.constant 0 : i32
    %c0_i32_1 = arith.constant 0 : i32
    return %c0_i32, %arg0, %c0_i32_0 : i32, i32, i32
  }
  func.func @transform_1(%arg0: i32) -> (i32, i32, i32) {
    %c0_i32 = arith.constant 0 : i32
    %c0_i32_0 = arith.constant 0 : i32
    %c0_i32_1 = arith.constant 0 : i32
    return %c0_i32, %arg0, %c0_i32_0 : i32, i32, i32
  }
  func.func @transform_2(%arg0: i32) -> (i32, i32, i32) {
    %c0_i32 = arith.constant 0 : i32
    %c0_i32_0 = arith.constant 0 : i32
    %c0_i32_1 = arith.constant 0 : i32
    return %c0_i32, %arg0, %c0_i32_0 : i32, i32, i32
  }
  func.func @transform_3(%arg0: i32) -> (i32, i32, i32) {
    %c0_i32 = arith.constant 0 : i32
    %c0_i32_0 = arith.constant 0 : i32
    %c0_i32_1 = arith.constant 0 : i32
    return %c0_i32, %arg0, %c0_i32_0 : i32, i32, i32
  }
}

</mosaic_0001>

<bundles_post_ra>
// kernel: tpu_custom_call.1
= control target key start
LH: loop header
LB: loop body
LE: loop exit
PB: predicated region body
PF: predicated region fallthrough
CT: control target
= control target key end

     0   :  { %s448_s0 = inlined_call_operand.vmem [shape: f32[2,4,256], index: 0, kind: input, shape index: {}]   ;;  %s449_s1 = inlined_call_operand.vmem [shape: f32[2,4,1], index: 1, kind: input, shape index: {}]   ;;  %s450_s2 = inlined_call_operand.vmem [shape: f32[2,4,1], index: 2, kind: input, shape index: {}]   ;;  %s451_s3 = inlined_call_operand.hbm [shape: f32[2,4,256], index: 3, kind: output, shape index: {}]  }
   0x1   :  { %v345_v0 = vld [vmem:[%s448_s0] sm:$0xff]  ;;  %v350_v1 = vld [vmem:[%s448_s0 + $0x8] sm:$0xff] }
   0x2   :  { %8 = vsyncpa [#allocation3], 0  ;;  %19 = vst [vmem:[#allocation1] ss:$2 sm:$0xff] %v345_v0  ;;  %v41_v2 = vmul.f32 %v345_v0, %v345_v0  ;;  %vm30_vm0 = vcmask 1043456   ;;  %v42_v3 = vmul.f32 %v350_v1, %v350_v1  ;;  %v316_v24 = vmov 2.0  }
   0x3   :  { %23 = vst [vmem:[#allocation1 + $0x10] ss:$2 sm:$0xff] %v350_v1  ;;  %276 = vrcp.f32 %v316_v24  ;;  %v317_v42 = vmov 0   ;;  %s255_s25 = sshll.u32 %s451_s3, 4  ;;  %s320_s26 = smov 128   ;;  %s256_s25 = int_to_ptr.hbm [resolvable:$true] %s255_s25 }
   0x4   :  { %273 = vset.pattern.permute.xlu2 %v317_v42  ;;  %275 = vset.pattern.permute.xlu1 %v317_v42  ;;  %s321_s27 = smov 8  }
   0x5   :  { %274 = vset.pattern.permute.xlu0 %v317_v42 }
   0x9   :  { %v20_v4 = vld.sshfl [vmem:[#allocation1] sm:$0xff pattern:$0x75316420]  ;;  %v21_v5 = vld.sshfl [vmem:[#allocation1 + $0x8] sm:$0xff pattern:$0x75316420]  ;;  %v277_v25 = vpop.eup %276 }
   0xa   :  { %v31_v6 = vsel %vm30_vm0, %v20_v4, 0.0  ;;  %v32_v7 = vsel %vm30_vm0, %v21_v5, 0.0  ;;  %45 = vst [vmem:[#allocation1] ss:$2 sm:$0xff] %v41_v2  ;;  %v138_v27 = vmul.f32 2.0, %v277_v25  ;;  %vm142_vm1 = vweird.f32 %v277_v25 }
   0xb   :  { %v33_v8 = vadd.f32 %v32_v7, %v31_v6  ;;  %v24_v9 = vld.sshfl [vmem:[#allocation1 + $0x10] sm:$0xff pattern:$0x75316420]  ;;  %v25_v10 = vld.sshfl [vmem:[#allocation1 + $0x18] sm:$0xff pattern:$0x75316420] }
   0xc   :  { %49 = vst [vmem:[#allocation1 + $0x10] ss:$2 sm:$0xff] %v42_v3  ;;  %v36_v11 = vsel %vm30_vm0, %v24_v9, 0.0  ;;  %v37_v12 = vsel %vm30_vm0, %v25_v10, 0.0  ;;  %v139_v30 = vsub.f32 1.0, %v138_v27 }
   0xd   :  { %34 = vadd.xlane.f32.xlu0 %v33_v8  ;;  %v38_v15 = vadd.f32 %v37_v12, %v36_v11 }
   0xe   :  { %v140_v33 = vmul.f32 %v277_v25, %v139_v30 }
  0x10   :  { %v141_v39 = vadd.f32 %v277_v25, %v140_v33 }
  0x11   :  { %v46_v13 = vld.sshfl [vmem:[#allocation1] sm:$0xff pattern:$0x75316420]  ;;  %v47_v14 = vld.sshfl [vmem:[#allocation1 + $0x8] sm:$0xff pattern:$0x75316420] }
  0x12   :  { %v56_v16 = vsel %vm30_vm0, %v46_v13, 0.0  ;;  %v57_v17 = vsel %vm30_vm0, %v47_v14, 0.0  ;;  %v143_v47 = vsel %vm142_vm1, %v277_v25, %v141_v39 }
  0x13   :  { %v58_v18 = vadd.f32 %v57_v17, %v56_v16  ;;  %v50_v19 = vld.sshfl [vmem:[#allocation1 + $0x10] sm:$0xff pattern:$0x75316420]  ;;  %v51_v20 = vld.sshfl [vmem:[#allocation1 + $0x18] sm:$0xff pattern:$0x75316420] }
  0x14   :  { %v61_v21 = vsel %vm30_vm0, %v50_v19, 0.0  ;;  %v62_v22 = vsel %vm30_vm0, %v51_v20, 0.0 }
  0x15   :  { %59 = vadd.xlane.f32.xlu1 %v58_v18  ;;  %39 = vadd.xlane.f32.xlu0 %v38_v15  ;;  %v63_v23 = vadd.f32 %v62_v22, %v61_v21 }
  0x1d   :  { %64 = vadd.xlane.f32.xlu1 %v63_v23 }
  0x80   :  { %v35_v26 = vpop.xlane.xlu0 %34 }
  0x81   :  { %v366_v28 = vmul.f32 0.00390625, %v35_v26 }
  0x83   :  { %v68_v29 = vmul.f32 256.0, %v366_v28  ;;  %v134_v43 = vsel %vm30_vm0, %v366_v28, 0.0 }
  0x85   :  { %v70_v31 = vmul.f32 %v68_v29, %v366_v28 }
  0x88   :  { %v60_v32 = vpop.xlane.xlu1 %59  ;;  %v40_v34 = vpop.xlane.xlu0 %39 }
  0x89   :  { %v72_v35 = vsub.f32 %v60_v32, %v70_v31  ;;  %v370_v36 = vmul.f32 0.00390625, %v40_v34 }
  0x8b   :  { %v74_v37 = vmul.f32 0.003921569, %v72_v35  ;;  %v69_v38 = vmul.f32 256.0, %v370_v36  ;;  %v135_v40 = vsel %vm30_vm0, %v370_v36, 0.0 }
  0x8c   :  { %v136_v45 = vadd.f32 %v135_v40, %v134_v43 }
  0x8d   :  { %v76_v41 = vmax.f32 %v74_v37, 0.0  ;;  %v71_v46 = vmul.f32 %v69_v38, %v370_v36 }
  0x8e   :  { %v144_v50 = vmul.f32 %v143_v47, %v136_v45 }
  0x8f   :  { %v78_v44 = vadd.f32 1e-06, %v76_v41 }
  0x90   :  { %v65_v48 = vpop.xlane.xlu1 %64  ;;  %v145_v54 = vsub.f32 %v366_v28, %v144_v50  ;;  %v146_v55 = vsub.f32 %v370_v36, %v144_v50 }
  0x91   :  { %278 = vrsqrt.f32 %v78_v44  ;;  %v73_v49 = vsub.f32 %v65_v48, %v71_v46  ;;  %vm87_vm2 = vcmp.eq.f32.partialorder %v78_v44, inf  ;;  %v90_v14 = vand.u32 2147483648, %v78_v44 }
  0x92   :  { %v147_v59 = vmul.f32 %v145_v54, %v145_v54  ;;  %v148_v60 = vmul.f32 %v146_v55, %v146_v55  ;;  %vm89_vm3 = vcmp.eq.f32.partialorder %v78_v44, 0.0 }
  0x93   :  { %v75_v51 = vmul.f32 0.003921569, %v73_v49 }
  0x94   :  { %v149_v2 = vsel %vm30_vm0, %v147_v59, 0.0  ;;  %v150_v3 = vsel %vm30_vm0, %v148_v60, 0.0 }
  0x95   :  { %v77_v52 = vmax.f32 %v75_v51, 0.0  ;;  %v151_v6 = vadd.f32 %v150_v3, %v149_v2  ;;  %v192_v2 = vld [vmem:[%s450_s2 + $0x4] sm:$0xf] }
  0x97   :  { %v279_v53 = vpop.eup %278  ;;  %v79_v56 = vadd.f32 1e-06, %v77_v52  ;;  %v382_v10 = vadd.f32 1e-06, %v151_v6 }
  0x98   :  { %v81_v57 = vmul.f32 %v279_v53, %v78_v44 }
  0x99   :  { %280 = vrsqrt.f32 %v79_v56  ;;  %vm99_vm4 = vcmp.eq.f32.partialorder %v79_v56, inf  ;;  %v102_v16 = vand.u32 2147483648, %v79_v56  ;;  %vm101_vm5 = vcmp.eq.f32.partialorder %v79_v56, 0.0 }
  0x9a   :  { %v82_v58 = vmul.f32 %v279_v53, %v81_v57  ;;  %282 = vrsqrt.f32 %v382_v10  ;;  %vm160_vm6 = vcmp.eq.f32.partialorder %v382_v10, inf  ;;  %vm162_vm7 = vcmp.eq.f32.partialorder %v382_v10, 0.0 }
  0x9c   :  { %v83_v61 = vmul.f32 0.5, %v82_v58 }
  0x9e   :  { %v84_v62 = vsub.f32 1.5, %v83_v61  ;;  %v191_v61 = vld [vmem:[%s450_s2] sm:$0xf] }
  0x9f   :  { %v281_v63 = vpop.eup %280 }
  0xa0   :  { %v93_v4 = vmul.f32 %v281_v63, %v79_v56  ;;  %v85_v5 = vmul.f32 %v279_v53, %v84_v62  ;;  %v283_v23 = vpop.eup %282 }
  0xa1   :  { %v154_v27 = vmul.f32 %v283_v23, %v382_v10 }
  0xa2   :  { %v94_v7 = vmul.f32 %v281_v63, %v93_v4  ;;  %v86_v9 = vmul.f32 %v85_v5, %v78_v44 }
  0xa3   :  { %v155_v33 = vmul.f32 %v283_v23, %v154_v27 }
  0xa4   :  { %v95_v8 = vmul.f32 0.5, %v94_v7  ;;  %v88_v13 = vsel %vm87_vm2, %v78_v44, %v86_v9  ;;  %v189_v7 = vld [vmem:[%s449_s1] sm:$0xf] }
  0xa5   :  { %v385_v17 = vsel %vm89_vm3, %v90_v14, %v88_v13  ;;  %v156_v37 = vmul.f32 0.5, %v155_v33 }
  0xa6   :  { %v96_v11 = vsub.f32 1.5, %v95_v8  ;;  %v165_v20 = vsel %vm30_vm0, %v385_v17, 0.0  ;;  %284 = vrcp.f32 %v385_v17  ;;  %vm109_vm8 = vweird.f32 %v385_v17 }
  0xa7   :  { %v157_v40 = vsub.f32 1.5, %v156_v37  ;;  %v113_v57 = vand.u32 2147483647, %v385_v17  ;;  %v115_v58 = vand.u32 2147483648, %v385_v17 }
  0xa8   :  { %v97_v12 = vmul.f32 %v281_v63, %v96_v11  ;;  %v190_v11 = vld [vmem:[%s449_s1 + $0x4] sm:$0xf]  ;;  %s319_s1 = smov [#allocation2]  }
  0xa9   :  { %v158_v45 = vmul.f32 %v283_v23, %v157_v40  ;;  %s253_s22 = sshll.u32 %s319_s1, 4  ;;  %s254_s22 = int_to_ptr.vmem [resolvable:$true] %s253_s22 }
  0xaa   :  { %v98_v15 = vmul.f32 %v97_v12, %v79_v56 }
  0xab   :  { %v159_v50 = vmul.f32 %v158_v45, %v382_v10 }
  0xac   :  { %v100_v18 = vsel %vm99_vm4, %v79_v56, %v98_v15  ;;  %v285_v38 = vpop.eup %284  ;;  %v163_v56 = vand.u32 2147483648, %v382_v10 }
  0xad   :  { %v387_v19 = vsel %vm101_vm5, %v102_v16, %v100_v18  ;;  %v105_v41 = vmul.f32 %v285_v38, %v385_v17  ;;  %v161_v55 = vsel %vm160_vm6, %v382_v10, %v159_v50  ;;  %vm110_vm9 = vweird.f32 %v285_v38 }
  0xae   :  { %v166_v21 = vsel %vm30_vm0, %v387_v19, 0.0  ;;  %286 = vrcp.f32 %v387_v19  ;;  %v164_v3 = vsel %vm162_vm7, %v163_v56, %v161_v55  ;;  %v130_v4 = vand.u32 2147483648, %v387_v19  ;;  %vm417_vm12 = vmor %vm109_vm8, %vm110_vm9 }
  0xaf   :  { %v167_v22 = vadd.f32 %v166_v21, %v165_v20  ;;  %v106_v46 = vsub.f32 1.0, %v105_v41  ;;  %vm124_vm14 = vweird.f32 %v387_v19  ;;  %v128_v8 = vand.u32 2147483647, %v387_v19 }
  0xb0   :  { %v116_v16 = vor.u32 1.1754944e-38, %v115_v58  ;;  %v193_v18 = vmul.f32 %v189_v7, %v164_v3  ;;  %v131_v20 = vor.u32 1.1754944e-38, %v130_v4  ;;  %v194_v23 = vmul.f32 %v190_v11, %v164_v3 }
  0xb1   :  { %v168_v24 = vmul.f32 %v167_v22, %v143_v47  ;;  %v107_v51 = vmul.f32 %v285_v38, %v106_v46  ;;  %vm129_vm1 = vcmp.eq.f32.partialorder %v128_v8, 8.507059e+37 }
  0xb3   :  { %v169_v25 = vsub.f32 %v385_v17, %v168_v24  ;;  %v170_v26 = vsub.f32 %v387_v19, %v168_v24  ;;  %v108_v59 = vadd.f32 %v285_v38, %v107_v51 }
  0xb4   :  { %v287_v39 = vpop.eup %286 }
  0xb5   :  { %v171_v29 = vmul.f32 %v169_v25, %v169_v25  ;;  %v172_v30 = vmul.f32 %v170_v26, %v170_v26  ;;  %v120_v42 = vmul.f32 %v287_v39, %v387_v19  ;;  %vm125_vm10 = vweird.f32 %v287_v39 }
  0xb6   :  { %vm426_vm15 = vmor %vm124_vm14, %vm125_vm10  ;;  %v112_v12 = vsel %vm417_vm12, %v285_v38, %v108_v59 }
  0xb7   :  { %v173_v31 = vsel %vm30_vm0, %v171_v29, 0.0  ;;  %v174_v32 = vsel %vm30_vm0, %v172_v30, 0.0  ;;  %v121_v48 = vsub.f32 1.0, %v120_v42  ;;  %vm114_vm0 = vcmp.eq.f32.partialorder %v113_v57, 8.507059e+37 }
  0xb8   :  { %v175_v34 = vadd.f32 %v174_v32, %v173_v31  ;;  %v117_v24 = vsel %vm114_vm0, %v116_v16, %v112_v12  ;;  %v195_v30 = vadd.f32 %v193_v18, %v366_v28  ;;  %v196_v31 = vadd.f32 %v194_v23, %v370_v36 }
  0xb9   :  { %v122_v53 = vmul.f32 %v287_v39, %v121_v48 }
  0xba   :  { %v176_v35 = vadd.f32 1e-06, %v175_v34 }
  0xbb   :  { %v123_v62 = vadd.f32 %v287_v39, %v122_v53 }
  0xbc   :  { %288 = vrsqrt.f32 %v176_v35  ;;  %vm184_vm11 = vcmp.eq.f32.partialorder %v176_v35, inf  ;;  %v187_v63 = vand.u32 2147483648, %v176_v35  ;;  %vm186_vm13 = vcmp.eq.f32.partialorder %v176_v35, 0.0 }
  0xbd   :  { %v127_v15 = vsel %vm426_vm15, %v287_v39, %v123_v62 }
  0xbe   :  { %v132_v25 = vsel %vm129_vm1, %v131_v20, %v127_v15 }
  0xc2   :  { %v289_v43 = vpop.eup %288 }
  0xc3   :  { %v178_v44 = vmul.f32 %v289_v43, %v176_v35 }
  0xc5   :  { %v179_v47 = vmul.f32 %v289_v43, %v178_v44 }
  0xc7   :  { %v180_v49 = vmul.f32 0.5, %v179_v47 }
  0xc9   :  { %v181_v52 = vsub.f32 1.5, %v180_v49 }
  0xcb   :  { %v182_v54 = vmul.f32 %v289_v43, %v181_v52 }
  0xcd   :  { %v183_v60 = vmul.f32 %v182_v54, %v176_v35 }
  0xcf   :  { %v185_v6 = vsel %vm184_vm11, %v176_v35, %v183_v60 }
  0xd0   :  { %v188_v9 = vsel %vm186_vm13, %v187_v63, %v185_v6 }
  0xd1   :  { %v197_v13 = vmul.f32 %v191_v61, %v188_v9  ;;  %v198_v14 = vmul.f32 %v192_v2, %v188_v9 }
  0xd3   :  { %v199_v21 = vadd.f32 %v197_v13, %v385_v17  ;;  %v200_v22 = vadd.f32 %v198_v14, %v387_v19  ;;  %v318_v19 = vmov 839922192  }
  0xd4   :  { %v216_v35 = vunpack.c.l.s4 %v318_v19 }
  0xd5   :  { %v201_v26 = vmul.f32 %v199_v21, %v117_v24  ;;  %v202_v27 = vmul.f32 %v200_v22, %v132_v25 }
  0xd6   :  { %v217_v37 = vunpack.c.0.s8 %v216_v35 }
  0xd7   :  { %209 = vperm.xlu2 %273, %v201_v26   ;;  %v203_v29 = vmul.f32 %v201_v26, %v366_v28  ;;  %v204_v32 = vmul.f32 %v202_v27, %v370_v36 }
  0xd9   :  { %v205_v33 = vsub.f32 %v195_v30, %v203_v29  ;;  %v206_v34 = vsub.f32 %v196_v31, %v204_v32 }
  0xdb   :  { %229 = vperm.xlu0 %274, %v205_v33   ;;  %233 = vperm.xlu1 %275, %v206_v34  }
  0xdf   :  { %213 = vperm.xlu2 %273, %v202_v27  }
 0x131   :  { %v210_v17 = vpop.permute.xlu2 %209 }
 0x132   :  { %v218_v39 = vperm.slane %v210_v17, %v217_v37 }
 0x134   :  { %v225_v28 = vmul.f32 %v218_v39, %v345_v0 }
 0x139   :  { %v214_v38 = vpop.permute.xlu2 %213 }
 0x13a   :  { %v222_v40 = vperm.slane %v214_v38, %v217_v37 }
 0x13c   :  { %v226_v36 = vmul.f32 %v222_v40, %v350_v1 }
 0x14d   :  { %v230_v41 = vpop.permute.xlu0 %229  ;;  %v234_v42 = vpop.permute.xlu1 %233 }
 0x14e   :  { %v238_v43 = vperm.slane %v230_v41, %v217_v37  ;;  %v242_v44 = vperm.slane %v234_v42, %v217_v37 }
 0x150   :  { %v245_v45 = vadd.f32 %v238_v43, %v225_v28  ;;  %v246_v46 = vadd.f32 %v242_v44, %v226_v36 }
 0x152   :  { %247 = vst [vmem:[#allocation2] sm:$0xff] %v245_v45 }
 0x153   :  { %248 = vst [vmem:[#allocation2 + $0x8] sm:$0xff] %v246_v46 }
 0x154   :  { %261 = dma.vmem_to_hbm [thread:$0]  %s254_s22, 256, %s256_s25, [#allocation3], %s320_s26, %s320_s26, %s321_s27  }
 0x155   :  { %314 = dma.done.wait [#allocation3], 256  }
 0x156   :  { %315 = vsyncadd [#allocation3], 4294967040 }
 0x157   :  { %266 = vsyncpa [#allocation3], 1 }

</bundles_post_ra>
